<compile_context>
chip_gen: v7x
topology: tpu7x:2x2x1
jax: 0.10.0
libtpu: 0.0.40
codegen_flags: <defaults>
</compile_context>

<pallas_src>
import functools

import jax
import jax.numpy as jnp
from jax import lax
from jax.experimental import pallas as pl
from jax.experimental.pallas import tpu as pltpu

LANE = 128
LEAKY_SLOPE = 0.2                       # GATConv default negative_slope
BN_EPS = 1e-5                           # BatchNorm1d default eps
_VMEM_LIMIT_BYTES = 40 * 1024 * 1024    # raised scoped-VMEM cap (safe on v5e/v6e/v7x)
_VMEM_BUDGET_BYTES = 24 * 1024 * 1024   # attend-kernel working-set target


def _round_up(x, m):
    return ((x + m - 1) // m) * m


def _plan_tiling(n, num_heads, d_pad, budget_bytes=_VMEM_BUDGET_BYTES):
    """Pick (row_tile, padded_n).  Guarantees >= 2 row tiles (both v7x TensorCores get
    work) and keeps the attend working set under budget: double-buffered bf16 adjacency
    stripe + ~2 live f32 (T, N) temporaries + resident RHS/alpha arrays + out blocks."""
    for tile in (1024, 512, 256, 128):
        n_pad = _round_up(n, tile)
        if n_pad // tile < 2:
            continue                                    # need >= 2 parallel row tiles
        work = (2 * tile * n_pad * 2                    # gate stream (bf16, double buf)
                + 2 * tile * n_pad * 4                  # live f32 logit/exp temporaries
                + num_heads * n_pad * 2 * d_pad * 2     # resident packed RHS (bf16)
                + num_heads * n_pad * 4                 # resident alpha_src rows (f32)
                + 2 * tile * d_pad * 6)                 # double-buffered out blocks
        if work <= budget_bytes:
            return tile, n_pad
    return 128, _round_up(max(n, 256), 128)


# --------------------------------------------------------------------------------------
# Kernel 1: per-head linear projection + attention alphas (all on the MXU).
# --------------------------------------------------------------------------------------
def _project_kernel(x_ref, w_ref, v_ref, xp_ref, alpha_ref, *, num_heads):
    x = x_ref[...].astype(jnp.bfloat16)                                   # (T, F_in)
    for h in range(num_heads):
        xp_ref[h] = jnp.dot(x, w_ref[h],
                            preferred_element_type=jnp.float32).astype(jnp.bfloat16)
    # alphas = [alpha_dst | alpha_src]: one (T, F_in) x (F_in, 2H) matmul against the
    # attention vectors folded into input space (v = W^T a), replacing 2H degenerate
    # per-head dot_generals.
    alpha_ref[...] = jnp.dot(x, v_ref[...], preferred_element_type=jnp.float32)


def _project(x, w_heads, v_vecs, *, row_tile):
    n = x.shape[0]
    num_heads, f_in, c = w_heads.shape
    two_h = v_vecs.shape[1]
    nt = n // row_tile
    kernel = functools.partial(_project_kernel, num_heads=num_heads)
    return pl.pallas_call(
        kernel,
        out_shape=(jax.ShapeDtypeStruct((num_heads, n, c), jnp.bfloat16),
                   jax.ShapeDtypeStruct((n, two_h), jnp.float32)),
        grid_spec=pltpu.PrefetchScalarGridSpec(
            num_scalar_prefetch=0, grid=(nt,),
            in_specs=[
                pl.BlockSpec((row_tile, f_in), lambda i: (i, 0)),
                pl.BlockSpec((num_heads, f_in, c), lambda i: (0, 0, 0)),   # resident
                pl.BlockSpec((f_in, two_h), lambda i: (0, 0)),             # resident
            ],
            out_specs=(
                pl.BlockSpec((num_heads, row_tile, c), lambda i: (0, i, 0)),
                pl.BlockSpec((row_tile, two_h), lambda i: (i, 0)),
            )),
        compiler_params=pltpu.CompilerParams(dimension_semantics=("parallel",)),
    )(x, w_heads, v_vecs)


# --------------------------------------------------------------------------------------
# Kernel 2: masked multi-head attention aggregation over a tile of target rows.
# --------------------------------------------------------------------------------------
def _attend_kernel(gate_ref, rhs_ref, asrc_ref, adst_ref, bound_ref,
                   scale_ref, shift_ref, out_ref, *, num_heads, d_pad, apply_relu):
    gate = gate_ref[...]                                   # (T, N) bf16 0/1 edge gate
    acc = None
    for h in range(num_heads):
        # e[i, j] = LeakyReLU(alpha_dst[i] + alpha_src[j])
        e = adst_ref[:, h:h + 1] + asrc_ref[h:h + 1, :]    # (T, N) f32, broadcast add
        e = jnp.maximum(e, LEAKY_SLOPE * e)                # LeakyReLU: vmul + vmax
        # Subtract a per-row upper bound (monotone in alpha_src) instead of a row max:
        # removes the (T, N) XLU lane reduce.  Safe while the logit spread stays << 80
        # (otherwise exp of all valid neighbors can underflow).
        e = e - bound_ref[:, h:h + 1]
        # Masked softmax numerators; normalization happens after the matmul.
        p = jnp.exp(e).astype(jnp.bfloat16) * gate         # (T, N) bf16
        # rhs[h] packs [block-positioned xp_h | per-head ones block], so one 2*d_pad-wide
        # matmul yields both the weighted sum and a lane-matched row-sum (MXU row-sum).
        part = jnp.dot(p, rhs_ref[h], preferred_element_type=jnp.float32)  # (T, 2*d_pad)
        acc = part if acc is None else acc + part
    agg = acc[:, :d_pad] * pl.reciprocal(acc[:, d_pad:], approx=True)
    # Folded GATConv bias (+ eval-mode BatchNorm for layer 0) as scale/shift.
    res = agg * scale_ref[...] + shift_ref[...]
    if apply_relu:
        res = jnp.maximum(res, 0.0)
    out_ref[...] = res.astype(out_ref.dtype)               # single lane-dense store


def _attend(gate, rhs, a_src, a_dst, bound, scale, shift,
            *, row_tile, d_pad, out_dtype, apply_relu):
    num_heads, n, _ = rhs.shape
    nt = n // row_tile
    kernel = functools.partial(_attend_kernel, num_heads=num_heads, d_pad=d_pad,
                               apply_relu=apply_relu)
    return pl.pallas_call(
        kernel,
        out_shape=jax.ShapeDtypeStruct((n, d_pad), out_dtype),
        grid_spec=pltpu.PrefetchScalarGridSpec(
            num_scalar_prefetch=0, grid=(nt,),
            in_specs=[
                pl.BlockSpec((row_tile, n), lambda i: (i, 0)),               # streamed gate
                pl.BlockSpec((num_heads, n, 2 * d_pad), lambda i: (0, 0, 0)),  # resident
                pl.BlockSpec((num_heads, n), lambda i: (0, 0)),              # resident
                pl.BlockSpec((row_tile, num_heads), lambda i: (i, 0)),
                pl.BlockSpec((row_tile, num_heads), lambda i: (i, 0)),
                pl.BlockSpec((1, d_pad), lambda i: (0, 0)),
                pl.BlockSpec((1, d_pad), lambda i: (0, 0)),
            ],
            out_specs=pl.BlockSpec((row_tile, d_pad), lambda i: (i, 0))),
        compiler_params=pltpu.CompilerParams(
            dimension_semantics=("parallel",),
            vmem_limit_bytes=_VMEM_LIMIT_BYTES),
    )(gate, rhs, a_src, a_dst, bound, scale, shift)


# --------------------------------------------------------------------------------------
# Kernel 3: global mean pool (cross-tile accumulator) + MLP prediction head.
# --------------------------------------------------------------------------------------
def _pool_head_kernel(emb_ref, wp1_ref, bp1_ref, wp2_ref, bp2_ref,
                      pred_ref, acc_ref, *, n_valid, row_tile, mask_rows):
    @pl.when(pl.program_id(0) == 0)
    def _():
        acc_ref[...] = jnp.zeros_like(acc_ref)

    e = emb_ref[...]
    if mask_rows:
        rows = pl.program_id(0) * row_tile + lax.broadcasted_iota(jnp.int32, e.shape, 0)
        e = jnp.where(rows < n_valid, e, 0.0)               # drop padded rows
    acc_ref[...] += jnp.sum(e, axis=0, keepdims=True)

    @pl.when(pl.program_id(0) == pl.num_programs(0) - 1)
    def _():
        g = acc_ref[...] * (1.0 / n_valid)                                   # mean pool
        hdd = jnp.maximum(
            jnp.dot(g, wp1_ref[...], preferred_element_type=jnp.float32) + bp1_ref[...],
            0.0)                                                             # Linear+ReLU
        pred_ref[...] = (jnp.dot(hdd, wp2_ref[...],                          # dropout=id
                                 preferred_element_type=jnp.float32) + bp2_ref[...])


def _pool_head(emb, wp1, bp1, wp2, bp2, *, row_tile, n_valid):
    n_pad, e_pad = emb.shape
    hid = wp1.shape[1]
    out_dim = wp2.shape[1]
    nt = n_pad // row_tile
    kernel = functools.partial(_pool_head_kernel, n_valid=n_valid, row_tile=row_tile,
                               mask_rows=(n_pad != n_valid))
    return pl.pallas_call(
        kernel,
        out_shape=jax.ShapeDtypeStruct((1, out_dim), jnp.float32),
        grid_spec=pltpu.PrefetchScalarGridSpec(
            num_scalar_prefetch=0, grid=(nt,),
            in_specs=[
                pl.BlockSpec((row_tile, e_pad), lambda i: (i, 0)),
                pl.BlockSpec((e_pad, hid), lambda i: (0, 0)),
                pl.BlockSpec((1, hid), lambda i: (0, 0)),
                pl.BlockSpec((hid, out_dim), lambda i: (0, 0)),
                pl.BlockSpec((1, out_dim), lambda i: (0, 0)),
            ],
            out_specs=pl.BlockSpec((1, out_dim), lambda i: (0, 0)),
            scratch_shapes=[pltpu.VMEM((1, e_pad), jnp.float32)]),
        compiler_params=pltpu.CompilerParams(dimension_semantics=("arbitrary",)),
    )(emb, wp1, bp1, wp2, bp2)


# --------------------------------------------------------------------------------------
# Wrapper helpers.
# --------------------------------------------------------------------------------------
def _pad_cols(a, width):
    return jnp.pad(a, ((0, 0), (0, width - a.shape[1])))


def _fold_alpha_vectors(w_heads, a_src, a_dst):
    """v = W^T a folded into input space: alphas = x @ [v_dst | v_src]  (exact math)."""
    v_dst = jnp.einsum("hfc,hc->fh", w_heads, a_dst)
    v_src = jnp.einsum("hfc,hc->fh", w_heads, a_src)
    return jnp.concatenate([v_dst, v_src], axis=1).astype(jnp.bfloat16)    # (F, 2H)


def _build_rhs(xp, d_pad):
    """Aggregation RHS per head: [block-positioned xp_h | per-head ones block] so one
    matmul produces the concatenated weighted sums and lane-matched denominators."""
    num_heads, n, c = xp.shape
    rhs = jnp.zeros((num_heads, n, 2 * d_pad), jnp.bfloat16)
    ones = jnp.ones((n, c), jnp.bfloat16)
    for h in range(num_heads):
        rhs = rhs.at[h, :, h * c:(h + 1) * c].set(xp[h])
        rhs = rhs.at[h, :, d_pad + h * c:d_pad + (h + 1) * c].set(ones)
    if num_heads * c < d_pad:
        # Keep padded output columns' denominators non-zero (0/den = 0, no NaNs).
        rhs = rhs.at[0, :, d_pad + num_heads * c:].set(jnp.bfloat16(1.0))
    return rhs


def _gat_layer(x_in, gate, w_heads, v_vecs, scale, shift,
               *, row_tile, n_valid, apply_relu, out_dtype):
    num_heads, _, c = w_heads.shape
    d_pad = _round_up(num_heads * c, LANE)
    xp, alphas = _project(x_in, w_heads, v_vecs, row_tile=row_tile)
    a_dst = alphas[:, :num_heads]                            # (N_pad, H)
    a_src_rows = alphas[:, num_heads:]                       # (N_pad, H)
    # Per-head scalar bound on the row max (LeakyReLU is monotone) — replaces the
    # in-kernel (T, N) row-max reduce.  Computed over valid nodes only.
    amax = jnp.max(a_src_rows[:n_valid], axis=0, keepdims=True)          # (1, H)
    b = a_dst + amax
    bound = jnp.maximum(b, LEAKY_SLOPE * b)                  # (N_pad, H) f32
    a_src = a_src_rows.T                                     # (H, N_pad) row layout
    rhs = _build_rhs(xp, d_pad)                              # (H, N_pad, 2*d_pad) bf16
    return _attend(gate, rhs, a_src, a_dst, bound, scale, shift,
                   row_tile=row_tile, d_pad=d_pad,
                   out_dtype=out_dtype, apply_relu=apply_relu)


# --------------------------------------------------------------------------------------
# Full eval-mode forward of SupervisedGATEncoder.
# --------------------------------------------------------------------------------------
def supervised_gat_encoder(x, adj, params, *, num_heads, hidden_dim, row_tile=None):
    """x: (N, F_in) f32; adj: (N, N) 0/1 with adj[i, j] = 1 iff edge j -> i (self-loops
    included).  Returns (node_embeddings (N, E), predictions (1, OUT))."""
    n, f_in = x.shape
    emb_dim = params["w1"].shape[1]
    d0 = num_heads * hidden_dim
    d0_pad = _round_up(d0, LANE)
    e_pad = _round_up(emb_dim, LANE)

    if row_tile is None:
        tile, n_pad = _plan_tiling(n, num_heads, d0_pad)
    else:
        tile = row_tile
        n_pad = _round_up(n, tile)

    # Adjacency as a bf16 0/1 multiplicative gate (halves the N^2 HBM stream vs f32).
    gate = (adj > 0).astype(jnp.bfloat16)
    if n_pad > n:
        pad_n = n_pad - n
        gate = jnp.pad(gate, ((0, pad_n), (0, pad_n)))
        ridx = jnp.arange(n, n_pad)
        gate = gate.at[ridx, ridx].set(1.0)        # self-loop keeps softmax well defined
        x = jnp.pad(x, ((0, pad_n), (0, 0)))

    # ---- layer 0 parameters (heads=H, concat=True) ----
    w0 = params["w0"].reshape(f_in, num_heads, hidden_dim).transpose(1, 0, 2)  # (H,F,C)
    v0 = _fold_alpha_vectors(w0, params["asrc0"], params["adst0"])             # (F,2H)
    bn_scale = params["bn_gamma"] * lax.rsqrt(params["bn_var"] + BN_EPS)
    scale0 = _pad_cols(bn_scale, d0_pad)
    shift0 = _pad_cols((params["b0"] - params["bn_mean"]) * bn_scale
                       + params["bn_beta"], d0_pad)

    # GAT layer 0 + eval BatchNorm + ReLU (+ identity dropout)
    h1 = _gat_layer(x, gate, w0.astype(jnp.bfloat16), v0, scale0, shift0,
                    row_tile=tile, n_valid=n, apply_relu=True,
                    out_dtype=jnp.bfloat16)                          # (N_pad, d0_pad)

    # ---- layer 1 parameters (heads=1, concat=False) ----
    w1 = jnp.pad(params["w1"], ((0, d0_pad - d0), (0, e_pad - emb_dim)))
    a_src1 = _pad_cols(params["asrc1"], e_pad)
    a_dst1 = _pad_cols(params["adst1"], e_pad)
    w1h = w1[None]                                                   # (1, d0_pad, e_pad)
    v1 = _fold_alpha_vectors(w1h, a_src1, a_dst1)                    # (d0_pad, 2)
    scale1 = jnp.ones((1, e_pad), jnp.float32)
    shift1 = _pad_cols(params["b1"], e_pad)

    emb_pad = _gat_layer(h1, gate, w1h.astype(jnp.bfloat16), v1, scale1, shift1,
                         row_tile=tile, n_valid=n, apply_relu=False,
                         out_dtype=jnp.float32)                      # (N_pad, e_pad)

    # ---- global mean pool (batch=None -> mean over nodes) + prediction head ----
    wp1 = jnp.pad(params["wp1"], ((0, e_pad - emb_dim), (0, 0)))
    pred = _pool_head(emb_pad, wp1, params["bp1"], params["wp2"], params["bp2"],
                      row_tile=tile, n_valid=n)

    return emb_pad[:n, :emb_dim], pred


# --------------------------------------------------------------------------------------
# Pure-JAX reference (f32) for a correctness check.
# --------------------------------------------------------------------------------------
def _reference(x, adj, params, *, num_heads, hidden_dim):
    n = x.shape[0]
    mask = adj > 0

    def gat(h, w, a_src, a_dst, heads, out_c, bias):
        xp = (h @ w).reshape(n, heads, out_c)
        asrc = jnp.einsum("nhc,hc->nh", xp, a_src)
        adst = jnp.einsum("nhc,hc->nh", xp, a_dst)
        e = adst[:, None, :] + asrc[None, :, :]
        e = jnp.where(e > 0, e, LEAKY_SLOPE * e)
        e = jnp.where(mask[:, :, None], e, -jnp.inf)
        p = jax.nn.softmax(e, axis=1)
        out = jnp.einsum("ijh,jhc->ihc", p, xp)
        return out.reshape(n, heads * out_c) + bias

    h1 = gat(x, params["w0"], params["asrc0"], params["adst0"],
             num_heads, hidden_dim, params["b0"])
    bn_scale = params["bn_gamma"] / jnp.sqrt(params["bn_var"] + BN_EPS)
    h1 = (h1 - params["bn_mean"]) * bn_scale + params["bn_beta"]
    h1 = jnp.maximum(h1, 0.0)
    emb_dim = params["w1"].shape[1]
    emb = gat(h1, params["w1"], params["asrc1"], params["adst1"], 1, emb_dim,
              params["b1"])
    g = jnp.mean(emb, axis=0, keepdims=True)
    hdd = jnp.maximum(g @ params["wp1"] + params["bp1"], 0.0)
    pred = hdd @ params["wp2"] + params["bp2"]
    return emb, pred


if __name__ == "__main__":
    # Small shapes consistent with the module: input_dim=8, hidden_dim=32, num_heads=4
    # (heads*hidden = 128, lane-dense), embedding_dim=32, num_layers=2,
    # prediction_task='total_load' (output_dim=1), N=256 graph nodes.
    N, F_IN = 256, 8
    HIDDEN, HEADS, EMB, OUT = 32, 4, 32, 1

    key = jax.random.PRNGKey(0)
    ks = jax.random.split(key, 16)

    def init(k, shape, scale=0.1):
        return scale * jax.random.normal(k, shape, dtype=jnp.float32)

    params = {
        "w0":       init(ks[0], (F_IN, HEADS * HIDDEN)),
        "asrc0":    init(ks[1], (HEADS, HIDDEN)),
        "adst0":    init(ks[2], (HEADS, HIDDEN)),
        "b0":       init(ks[3], (1, HEADS * HIDDEN), 0.05),
        # Raw BatchNorm1d buffers (eval mode); the wrapper folds them exactly.
        "bn_gamma": 1.0 + init(ks[4], (1, HEADS * HIDDEN), 0.05),
        "bn_beta":  init(ks[5], (1, HEADS * HIDDEN), 0.05),
        "bn_mean":  init(ks[6], (1, HEADS * HIDDEN), 0.05),
        "bn_var":   1.0 + jnp.abs(init(ks[7], (1, HEADS * HIDDEN), 0.05)),
        "w1":       init(ks[8], (HEADS * HIDDEN, EMB)),
        "asrc1":    init(ks[9], (1, EMB)),
        "adst1":    init(ks[10], (1, EMB)),
        "b1":       init(ks[11], (1, EMB), 0.05),
        "wp1":      init(ks[12], (EMB, HIDDEN)),
        "bp1":      init(ks[13], (1, HIDDEN), 0.05),
        "wp2":      init(ks[14], (HIDDEN, OUT)),
        "bp2":      init(ks[15], (1, OUT), 0.05),
    }

    x = jax.random.normal(jax.random.fold_in(key, 99), (N, F_IN), dtype=jnp.float32)

    # Bidirectional ring graph + self loops (GATConv add_self_loops=True).
    idx = jnp.arange(N)
    adj = jnp.zeros((N, N), jnp.float32)
    adj = adj.at[idx, (idx + 1) % N].set(1.0)
    adj = adj.at[(idx + 1) % N, idx].set(1.0)
    adj = adj.at[idx, idx].set(1.0)

    node_embeddings, predictions = supervised_gat_encoder(
        x, adj, params, num_heads=HEADS, hidden_dim=HIDDEN)
    jax.block_until_ready((node_embeddings, predictions))

    assert node_embeddings.shape == (N, EMB)
    assert predictions.shape == (1, OUT)
    assert bool(jnp.all(jnp.isfinite(node_embeddings)))
    assert bool(jnp.all(jnp.isfinite(predictions)))

    # Correctness vs. f32 reference (kernel uses bf16 operands + approx reciprocal).
    ref_emb, ref_pred = _reference(x, adj, params, num_heads=HEADS, hidden_dim=HIDDEN)
    assert bool(jnp.allclose(node_embeddings, ref_emb, atol=5e-2, rtol=5e-2))
    assert bool(jnp.allclose(predictions, ref_pred, atol=5e-2, rtol=5e-2))

    print("KERNEL_OK")
</pallas_src>

<mosaic_0001>
module attributes {stable_mosaic.version = 11 : i64} {
  func.func @_project_kernel(%arg0: i32, %arg1: memref<128x8xf32, #tpu.memory_space<vmem>>, %arg2: memref<4x8x32xbf16, #tpu.memory_space<vmem>>, %arg3: memref<8x8xbf16, #tpu.memory_space<vmem>>, %arg4: memref<4x128x32xbf16, #tpu.memory_space<vmem>>, %arg5: memref<128x8xf32, #tpu.memory_space<vmem>>) attributes {dimension_semantics = [#tpu.dimension_semantics<parallel>], iteration_bounds = array<i64: 2>, scalar_prefetch = 0 : i64, scratch_operands = 0 : i64, tpu.core_type = #tpu.core_type<tc>, window_params = [{transform_indices = @transform_0, window_bounds = array<i64: 128, 8>}, {pipeline_mode = #tpu.pipeline_mode<synchronous>, transform_indices = @transform_1, window_bounds = array<i64: 4, 8, 32>}, {pipeline_mode = #tpu.pipeline_mode<synchronous>, transform_indices = @transform_2, window_bounds = array<i64: 8, 8>}, {transform_indices = @transform_3, window_bounds = array<i64: 4, 128, 32>}, {transform_indices = @transform_4, window_bounds = array<i64: 128, 8>}]} {
    %c0 = arith.constant 0 : index
    %c0_0 = arith.constant 0 : index
    %0 = vector.load %arg1[%c0, %c0_0] : memref<128x8xf32, #tpu.memory_space<vmem>>, vector<128x8xf32>
    %1 = arith.truncf %0 : vector<128x8xf32> to vector<128x8xbf16>
    %c0_1 = arith.constant 0 : index
    %c0_2 = arith.constant 0 : index
    %c0_3 = arith.constant 0 : index
    %2 = vector.load %arg2[%c0_1, %c0_2, %c0_3] : memref<4x8x32xbf16, #tpu.memory_space<vmem>>, vector<1x8x32xbf16>
    %3 = vector.shape_cast %2 : vector<1x8x32xbf16> to vector<8x32xbf16>
    %cst = arith.constant dense<0.000000e+00> : vector<128x32xf32>
    %4 = tpu.matmul %1, %3, %cst {dimension_numbers = #tpu.dot_dimension_numbers<[1], [0], [0], [1], [0, 0, 1, 1], [], []>} : vector<128x8xbf16>, vector<8x32xbf16>, vector<128x32xf32> -> vector<128x32xf32>
    %5 = arith.truncf %4 : vector<128x32xf32> to vector<128x32xbf16>
    %c0_4 = arith.constant 0 : index
    %c0_5 = arith.constant 0 : index
    %c0_6 = arith.constant 0 : index
    %6 = vector.load %arg4[%c0_4, %c0_5, %c0_6] : memref<4x128x32xbf16, #tpu.memory_space<vmem>>, vector<1x128x32xbf16>
    %7 = vector.shape_cast %6 : vector<1x128x32xbf16> to vector<128x32xbf16>
    %8 = vector.shape_cast %5 : vector<128x32xbf16> to vector<1x128x32xbf16>
    tpu.vector_store %arg4[%c0_4, %c0_5, %c0_6], %8 {strides = array<i32>} : memref<4x128x32xbf16, #tpu.memory_space<vmem>>, vector<1x128x32xbf16>,
    %c1 = arith.constant 1 : index
    %c0_7 = arith.constant 0 : index
    %c0_8 = arith.constant 0 : index
    %9 = vector.load %arg2[%c1, %c0_7, %c0_8] : memref<4x8x32xbf16, #tpu.memory_space<vmem>>, vector<1x8x32xbf16>
    %10 = vector.shape_cast %9 : vector<1x8x32xbf16> to vector<8x32xbf16>
    %cst_9 = arith.constant dense<0.000000e+00> : vector<128x32xf32>
    %11 = tpu.matmul %1, %10, %cst_9 {dimension_numbers = #tpu.dot_dimension_numbers<[1], [0], [0], [1], [0, 0, 1, 1], [], []>} : vector<128x8xbf16>, vector<8x32xbf16>, vector<128x32xf32> -> vector<128x32xf32>
    %12 = arith.truncf %11 : vector<128x32xf32> to vector<128x32xbf16>
    %c1_10 = arith.constant 1 : index
    %c0_11 = arith.constant 0 : index
    %c0_12 = arith.constant 0 : index
    %13 = vector.load %arg4[%c1_10, %c0_11, %c0_12] : memref<4x128x32xbf16, #tpu.memory_space<vmem>>, vector<1x128x32xbf16>
    %14 = vector.shape_cast %13 : vector<1x128x32xbf16> to vector<128x32xbf16>
    %15 = vector.shape_cast %12 : vector<128x32xbf16> to vector<1x128x32xbf16>
    tpu.vector_store %arg4[%c1_10, %c0_11, %c0_12], %15 {strides = array<i32>} : memref<4x128x32xbf16, #tpu.memory_space<vmem>>, vector<1x128x32xbf16>,
    %c2 = arith.constant 2 : index
    %c0_13 = arith.constant 0 : index
    %c0_14 = arith.constant 0 : index
    %16 = vector.load %arg2[%c2, %c0_13, %c0_14] : memref<4x8x32xbf16, #tpu.memory_space<vmem>>, vector<1x8x32xbf16>
    %17 = vector.shape_cast %16 : vector<1x8x32xbf16> to vector<8x32xbf16>
    %cst_15 = arith.constant dense<0.000000e+00> : vector<128x32xf32>
    %18 = tpu.matmul %1, %17, %cst_15 {dimension_numbers = #tpu.dot_dimension_numbers<[1], [0], [0], [1], [0, 0, 1, 1], [], []>} : vector<128x8xbf16>, vector<8x32xbf16>, vector<128x32xf32> -> vector<128x32xf32>
    %19 = arith.truncf %18 : vector<128x32xf32> to vector<128x32xbf16>
    %c2_16 = arith.constant 2 : index
    %c0_17 = arith.constant 0 : index
    %c0_18 = arith.constant 0 : index
    %20 = vector.load %arg4[%c2_16, %c0_17, %c0_18] : memref<4x128x32xbf16, #tpu.memory_space<vmem>>, vector<1x128x32xbf16>
    %21 = vector.shape_cast %20 : vector<1x128x32xbf16> to vector<128x32xbf16>
    %22 = vector.shape_cast %19 : vector<128x32xbf16> to vector<1x128x32xbf16>
    tpu.vector_store %arg4[%c2_16, %c0_17, %c0_18], %22 {strides = array<i32>} : memref<4x128x32xbf16, #tpu.memory_space<vmem>>, vector<1x128x32xbf16>,
    %c3 = arith.constant 3 : index
    %c0_19 = arith.constant 0 : index
    %c0_20 = arith.constant 0 : index
    %23 = vector.load %arg2[%c3, %c0_19, %c0_20] : memref<4x8x32xbf16, #tpu.memory_space<vmem>>, vector<1x8x32xbf16>
    %24 = vector.shape_cast %23 : vector<1x8x32xbf16> to vector<8x32xbf16>
    %cst_21 = arith.constant dense<0.000000e+00> : vector<128x32xf32>
    %25 = tpu.matmul %1, %24, %cst_21 {dimension_numbers = #tpu.dot_dimension_numbers<[1], [0], [0], [1], [0, 0, 1, 1], [], []>} : vector<128x8xbf16>, vector<8x32xbf16>, vector<128x32xf32> -> vector<128x32xf32>
    %26 = arith.truncf %25 : vector<128x32xf32> to vector<128x32xbf16>
    %c3_22 = arith.constant 3 : index
    %c0_23 = arith.constant 0 : index
    %c0_24 = arith.constant 0 : index
    %27 = vector.load %arg4[%c3_22, %c0_23, %c0_24] : memref<4x128x32xbf16, #tpu.memory_space<vmem>>, vector<1x128x32xbf16>
    %28 = vector.shape_cast %27 : vector<1x128x32xbf16> to vector<128x32xbf16>
    %29 = vector.shape_cast %26 : vector<128x32xbf16> to vector<1x128x32xbf16>
    tpu.vector_store %arg4[%c3_22, %c0_23, %c0_24], %29 {strides = array<i32>} : memref<4x128x32xbf16, #tpu.memory_space<vmem>>, vector<1x128x32xbf16>,
    %c0_25 = arith.constant 0 : index
    %c0_26 = arith.constant 0 : index
    %30 = vector.load %arg3[%c0_25, %c0_26] : memref<8x8xbf16, #tpu.memory_space<vmem>>, vector<8x8xbf16>
    %cst_27 = arith.constant dense<0.000000e+00> : vector<128x8xf32>
    %31 = tpu.matmul %1, %30, %cst_27 {dimension_numbers = #tpu.dot_dimension_numbers<[1], [0], [0], [1], [0, 0, 1, 1], [], []>} : vector<128x8xbf16>, vector<8x8xbf16>, vector<128x8xf32> -> vector<128x8xf32>
    %c0_28 = arith.constant 0 : index
    %c0_29 = arith.constant 0 : index
    %32 = vector.load %arg5[%c0_28, %c0_29] : memref<128x8xf32, #tpu.memory_space<vmem>>, vector<128x8xf32>
    tpu.vector_store %arg5[%c0_28, %c0_29], %31 {strides = array<i32>} : memref<128x8xf32, #tpu.memory_space<vmem>>, vector<128x8xf32>,
    return
  }
  func.func @transform_0(%arg0: i32) -> (i32, i32) {
    %c0_i32 = arith.constant 0 : i32
    %c0_i32_0 = arith.constant 0 : i32
    return %arg0, %c0_i32 : i32, i32
  }
  func.func @transform_1(%arg0: i32) -> (i32, i32, i32) {
    %c0_i32 = arith.constant 0 : i32
    %c0_i32_0 = arith.constant 0 : i32
    %c0_i32_1 = arith.constant 0 : i32
    %c0_i32_2 = arith.constant 0 : i32
    return %c0_i32, %c0_i32_0, %c0_i32_1 : i32, i32, i32
  }
  func.func @transform_2(%arg0: i32) -> (i32, i32) {
    %c0_i32 = arith.constant 0 : i32
    %c0_i32_0 = arith.constant 0 : i32
    %c0_i32_1 = arith.constant 0 : i32
    return %c0_i32, %c0_i32_0 : i32, i32
  }
  func.func @transform_3(%arg0: i32) -> (i32, i32, i32) {
    %c0_i32 = arith.constant 0 : i32
    %c0_i32_0 = arith.constant 0 : i32
    %c0_i32_1 = arith.constant 0 : i32
    return %c0_i32, %arg0, %c0_i32_0 : i32, i32, i32
  }
  func.func @transform_4(%arg0: i32) -> (i32, i32) {
    %c0_i32 = arith.constant 0 : i32
    %c0_i32_0 = arith.constant 0 : i32
    return %arg0, %c0_i32 : i32, i32
  }
}

</mosaic_0001>

<bundles_post_ra>
// kernel: tpu_custom_call.1
= control target key start
LH: loop header
LB: loop body
LE: loop exit
PB: predicated region body
PF: predicated region fallthrough
CT: control target
= control target key end

     0   :  { %s1944_s15 = smov 0   ;;  %s1946_s16 = smov 0   ;;  %s2318_s0 = inlined_call_operand.vmem [shape: f32[256,8], index: 0, kind: input, shape index: {}]   ;;  %s2319_s1 = inlined_call_operand.vmem [shape: bf16[4,8,32], index: 1, kind: input, shape index: {}]   ;;  %s2320_s2 = inlined_call_operand.vmem [shape: bf16[8,8], index: 2, kind: input, shape index: {}]   ;;  %s2321_s3 = inlined_call_operand.vmem [shape: bf16[4,256,32], index: 3, kind: output, shape index: {0}]   ;;  %s2322_s4 = inlined_call_operand.vmem [shape: f32[256,8], index: 4, kind: output, shape index: {1}]  }
   0x1   :  { %s1948_s17 = smov 0  }
   0x2 LB: > { %s1957_s18 = sadd.s32 4294967295, %s1917_s17   ;;  %s1959_s19 = sadd.s32 1, %s1917_s17   ;;  %s1917_s17 = sphi %s1948_s17, %s2326_s17   ;;  %s1913_s16 = sphi %s1946_s16, %s2325_s16   ;;  %s1909_s15 = sphi %s1944_s15, %s2324_s15  }
   0x3   : > { %s87_s20 = ssub.s32 %s1917_s17, %s1959_s19  ;;  %s90_s21 = sadd.s32 1, %s1913_s16 }
   0x4   : > { %p88_p0 = scmp.eq.s32.totalorder %s87_s20, 0  ;;  %p100_p1 = scmp.ne.s32.totalorder %s1913_s16, %s1909_s15 }
   0x5   : > { %p101_p2 = scmp.eq.s32.totalorder %s1957_s18, 1  ;;  %p1497_p3 = scmp.ge.s32.totalorder %s1917_s17, 1 }
   0x6   : > { %s1967_s22 = scalar_select %p88_p0, %s1913_s16, %s90_s21  }
   0x7   : > { %p1969_p4 = por %p101_p2, %p100_p1  ;;  %p166_p5 = scmp.lt.s32.totalorder %s1917_s17, 3 }
   0x9   : > { %p167_p6 = pnand %p1497_p3, %p166_p5 }
   0xa   : > { %v234_v0 = vld [vmem:[%s2319_s1] sm:$0xf] (!%p167_p6)  ;;  %vm260_vm0 = vcmask (!%p167_p6), 1043456   ;;  %s1499_s26 = sshll.u32 (!%p167_p6), %s1957_s18, 4  ;;  %v1527_v2 = vld [vmem:[%s2319_s1 + $0x4] sm:$0xf] (!%p167_p6) }
   0xb   : > { %170 = sbr.rel (%p167_p6) target bundleno = 324 (0x144), region = 32  ;;  %1866 = vmatprep.subr.msk.bf16.mxu1 (!%p167_p6), %vm260_vm0, %v234_v0  ;;  %1865 = vmatprep.subr.msk.bf16.mxu0 (!%p167_p6), %vm260_vm0, %v234_v0  ;;  %v262_v1 = vsel (!%p167_p6), %vm260_vm0, %v234_v0, 0  ;;  %p197_p7 = scmp.lt.s32.totalorder (!%p167_p6), %s1499_s26, 31  ;;  %v1568_v3 = vld [vmem:[%s2319_s1 + $0x8] sm:$0xf] (!%p167_p6)  ;;  %vm235_vm1 = vcmask (!%p167_p6), 64512  }
   0xc   : > { %1864 = vmatpush3.bf16.msra.mxu1 (!%p167_p6), %v262_v1  ;;  %1774 = vmatpush3.bf16.msra.mxu0 (!%p167_p6), %v262_v1  ;;  %v628_v15 = vsel (!%p167_p6), %vm260_vm0, %v1568_v3, 0  ;;  %v445_v18 = vsel (!%p167_p6), %vm260_vm0, %v1527_v2, 0  ;;  %v1609_v24 = vld [vmem:[%s2319_s1 + $0xc] sm:$0xf] (!%p167_p6)  ;;  %v991_v27 = vld [vmem:[%s2320_s2] sm:$0xf] (!%p167_p6) }
   0xd   : > { %1867 = vmatprep.subr.msk.bf16.mxu1 (!%p167_p6), %vm260_vm0, %v1527_v2  ;;  %1868 = vmatprep.subr.msk.bf16.mxu0 (!%p167_p6), %vm260_vm0, %v1568_v3  ;;  %v993_v32 = vsel (!%p167_p6), %vm260_vm0, %v991_v27, 0  ;;  %v811_v33 = vsel (!%p167_p6), %vm260_vm0, %v1609_v24, 0  ;;  %s186_s13 = sand.u32 (!%p167_p6), 1, %s1909_s15   ;;  %vm425_vm2 = vcmask (!%p167_p6), 257024  }
   0xe   : > { %s1498_s14 = sshll.u32 (!%p167_p6), %s186_s13, 8 }
   0xf   : > { %s2067_s17 = scalar_lea.vmem (!%p167_p6), [#allocation2], %s1498_s14 }
  0x12   : > { %s2328_s26 = smov (!%p197_p7, %s1499_s26), 31  ;;  %s1727_s24 = sshll.u32 (%p1969_p4), %s1957_s18, 6 }
  0x13   : > { %s1500_s5 = sshll.u32 %s2328_s26, 3  ;;  %s2245_s27 = scalar_lea.vmem (%p1969_p4), %s2321_s3, %s1727_s24 }
  0x14   : > { %s1996_s8 = scalar_lea.vmem %s2318_s0, %s1500_s5  ;;  %s2168_s21 = scalar_lea.vmem %s2322_s4, %s1500_s5 }
  0x15   : > { %v210_v4 = vld [vmem:[%s1996_s8] sm:$0xff]  ;;  %v211_v5 = vld [vmem:[%s1996_s8 + $0x8] sm:$0xff]  ;;  %v212_v9 = vld [vmem:[%s1996_s8 + $0x10] sm:$0xff] }
  0x16   : > { %v218_v6 = vld [vmem:[%s1996_s8 + $0x40] sm:$0xff]  ;;  %v226_v7 = vpack.c.bf16 %v211_v5, %v210_v4  ;;  %v219_v8 = vld [vmem:[%s1996_s8 + $0x48] sm:$0xff]  ;;  %v213_v10 = vld [vmem:[%s1996_s8 + $0x18] sm:$0xff] }
  0x17   : > { %v230_v11 = vpack.c.bf16 %v219_v8, %v218_v6  ;;  %v227_v12 = vpack.c.bf16 %v213_v10, %v212_v9  ;;  %v220_v13 = vld [vmem:[%s1996_s8 + $0x50] sm:$0xff]  ;;  %v221_v14 = vld [vmem:[%s1996_s8 + $0x58] sm:$0xff]  ;;  %v214_v16 = vld [vmem:[%s1996_s8 + $0x20] sm:$0xff] }
  0x18   : > { %1775 = vmatprep.mubr.msk.bf16.mxu0 %vm235_vm1, %v226_v7  ;;  %v231_v17 = vpack.c.bf16 %v221_v14, %v220_v13  ;;  %v215_v19 = vld [vmem:[%s1996_s8 + $0x28] sm:$0xff]  ;;  %v222_v20 = vld [vmem:[%s1996_s8 + $0x60] sm:$0xff]  ;;  %v216_v25 = vld [vmem:[%s1996_s8 + $0x30] sm:$0xff] }
  0x19   : > { %v223_v21 = vld [vmem:[%s1996_s8 + $0x68] sm:$0xff]  ;;  %1783 = vmatprep.mubr.msk.bf16.mxu1 %vm235_vm1, %v230_v11  ;;  %1776 = vmatmul.mubr.msk.bf16.vlgmr.msra.gmra.mrb[0].mxu0 %vm235_vm1, %v227_v12  ;;  %v228_v22 = vpack.c.bf16 %v215_v19, %v214_v16  ;;  %v217_v26 = vld [vmem:[%s1996_s8 + $0x38] sm:$0xff]  ;;  %v224_v28 = vld [vmem:[%s1996_s8 + $0x70] sm:$0xff] }
  0x1a   : > { %v232_v23 = vpack.c.bf16 %v223_v21, %v222_v20  ;;  %1784 = vmatmul.mubr.msk.bf16.vlgmr.msra.gmra.mrb[0].mxu1 %vm235_vm1, %v231_v17  ;;  %1810 = vmatpush3.bf16.msra.mxu0 %v628_v15  ;;  %v225_v29 = vld [vmem:[%s1996_s8 + $0x78] sm:$0xff]  ;;  %v229_v30 = vpack.c.bf16 %v217_v26, %v216_v25 }
  0x1b   : > { %1792 = vmatpush3.bf16.msra.mxu1 %v445_v18  ;;  %1779 = vmatprep.mubr.msk.bf16.mxu0 %vm235_vm1, %v228_v22  ;;  %v233_v31 = vpack.c.bf16 %v225_v29, %v224_v28 }
  0x1c   : > { %1787 = vmatprep.mubr.msk.bf16.mxu1 %vm235_vm1, %v232_v23  ;;  %1869 = vmatprep.subr.msk.bf16.mxu1 %vm260_vm0, %v1609_v24 }
  0x1d   : > { %1870 = vmatprep.subr.msk.bf16.mxu0 %vm260_vm0, %v991_v27 }
  0x21   : > { %1780 = vmatmul.mubr.msk.bf16.gmra.mrb[4].mxu0 %vm235_vm1, %v229_v30 }
  0x22   : > { %1788 = vmatmul.mubr.msk.bf16.gmra.mrb[4].mxu1 %vm235_vm1, %v233_v31  ;;  %1811 = vmatprep.mubr.msk.bf16.mxu0 %vm235_vm1, %v226_v7 }
  0x23   : > { %1793 = vmatprep.mubr.msk.bf16.mxu1 %vm235_vm1, %v226_v7 }
  0x29   : > { %1812 = vmatmul.mubr.msk.bf16.vlgmr.msra.gmra.mrb[8].mxu0 %vm235_vm1, %v227_v12 }
  0x2a   : > { %1794 = vmatmul.mubr.msk.bf16.vlgmr.msra.gmra.mrb[8].mxu1 %vm235_vm1, %v227_v12  ;;  %1846 = vmatpush3.bf16.msra.mxu0 %v993_v32 }
  0x2b   : > { %1828 = vmatpush3.bf16.msra.mxu1 %v811_v33  ;;  %1797 = vmatprep.mubr.msk.bf16.mxu1 %vm235_vm1, %v228_v22 }
  0x2c   : > { %1815 = vmatprep.mubr.msk.bf16.mxu0 %vm235_vm1, %v228_v22 }
  0x31   : > { %1816 = vmatmul.mubr.msk.bf16.gmra.mrb[12].mxu0 %vm235_vm1, %v229_v30 }
  0x32   : > { %1798 = vmatmul.mubr.msk.bf16.gmra.mrb[12].mxu1 %vm235_vm1, %v229_v30  ;;  %1819 = vmatprep.mubr.msk.bf16.mxu0 %vm235_vm1, %v230_v11 }
  0x33   : > { %1801 = vmatprep.mubr.msk.bf16.mxu1 %vm235_vm1, %v230_v11 }
  0x39   : > { %1820 = vmatmul.mubr.msk.bf16.gmra.mrb[16].mxu0 %vm235_vm1, %v231_v17 }
  0x3a   : > { %1802 = vmatmul.mubr.msk.bf16.gmra.mrb[16].mxu1 %vm235_vm1, %v231_v17  ;;  %1823 = vmatprep.mubr.msk.bf16.mxu0 %vm235_vm1, %v232_v23 }
  0x3b   : > { %1805 = vmatprep.mubr.msk.bf16.mxu1 %vm235_vm1, %v232_v23 }
  0x41   : > { %1824 = vmatmul.mubr.msk.bf16.gmra.mrb[20].mxu0 %vm235_vm1, %v233_v31 }
  0x42   : > { %1806 = vmatmul.mubr.msk.bf16.gmra.mrb[20].mxu1 %vm235_vm1, %v233_v31  ;;  %1847 = vmatprep.mubr.msk.bf16.mxu0 %vm235_vm1, %v226_v7 }
  0x43   : > { %1829 = vmatprep.mubr.msk.bf16.mxu1 %vm235_vm1, %v226_v7 }
  0x49   : > { %1848 = vmatmul.mubr.msk.bf16.vlgmr.msra.gmra.mrb[24].mxu0 %vm235_vm1, %v227_v12 }
  0x4a   : > { %1830 = vmatmul.mubr.msk.bf16.vlgmr.msra.gmra.mrb[24].mxu1 %vm235_vm1, %v227_v12  ;;  %1851 = vmatprep.mubr.msk.bf16.mxu0 %vm235_vm1, %v228_v22 }
  0x4b   : > { %1833 = vmatprep.mubr.msk.bf16.mxu1 %vm235_vm1, %v228_v22 }
  0x51   : > { %1852 = vmatmul.mubr.msk.bf16.gmra.mrb[28].mxu0 %vm235_vm1, %v229_v30 }
  0x52   : > { %1834 = vmatmul.mubr.msk.bf16.gmra.mrb[28].mxu1 %vm235_vm1, %v229_v30  ;;  %1855 = vmatprep.mubr.msk.bf16.mxu0 %vm235_vm1, %v230_v11 }
  0x53   : > { %1837 = vmatprep.mubr.msk.bf16.mxu1 %vm235_vm1, %v230_v11 }
  0x59   : > { %1856 = vmatmul.mubr.msk.bf16.gmra.mrb[32].mxu0 %vm235_vm1, %v231_v17 }
  0x5a   : > { %1838 = vmatmul.mubr.msk.bf16.gmra.mrb[32].mxu1 %vm235_vm1, %v231_v17  ;;  %1859 = vmatprep.mubr.msk.bf16.mxu0 %vm235_vm1, %v232_v23 }
  0x5b   : > { %1841 = vmatprep.mubr.msk.bf16.mxu1 %vm235_vm1, %v232_v23 }
  0x61   : > { %1860 = vmatmul.mubr.msk.bf16.gmra.mrb[36].mxu0 %vm235_vm1, %v233_v31 }
  0x62   : > { %1842 = vmatmul.mubr.msk.bf16.gmra.mrb[36].mxu1 %vm235_vm1, %v233_v31 }
  0xec   : > { %v1777_v34 = vpop.f32.mrb[0].mxu0 }
  0xed   : > { %v1665_v35 = vpack.c.bf16 %v1777_v34, %v1777_v34  ;;  %v1785_v36 = vpop.f32.mrb[0].mxu1  ;;  %v298_v37 = vpop.f32.mrb[1].mxu0 }
  0xee   : > { %v1673_v38 = vpack.c.bf16 %v1785_v36, %v1785_v36  ;;  %v1663_v39 = vpack.c.bf16 %v298_v37, %v298_v37  ;;  %v330_v40 = vpop.f32.mrb[1].mxu1  ;;  %v1778_v41 = vpop.f32.mrb[2].mxu0 }
  0xef   : > { %428 = vst.msk [vmem:[%s2067_s17 + $0x8] sm:$0xf] %vm425_vm2, %v1665_v35  ;;  %v1671_v42 = vpack.c.bf16 %v330_v40, %v330_v40  ;;  %v1666_v43 = vpack.c.bf16 %v1778_v41, %v1778_v41  ;;  %v1786_v44 = vpop.f32.mrb[2].mxu1  ;;  %v301_v45 = vpop.f32.mrb[3].mxu0 }
  0xf0   : > { %436 = vst.msk [vmem:[%s2067_s17 + $0x28] sm:$0xf] %vm425_vm2, %v1673_v38  ;;  %426 = vst.msk [vmem:[%s2067_s17] sm:$0xf] %vm425_vm2, %v1663_v39  ;;  %v1674_v46 = vpack.c.bf16 %v1786_v44, %v1786_v44  ;;  %v1664_v47 = vpack.c.bf16 %v301_v45, %v301_v45  ;;  %v333_v48 = vpop.f32.mrb[3].mxu1 }
  0xf1   : > { %434 = vst.msk [vmem:[%s2067_s17 + $0x20] sm:$0xf] %vm425_vm2, %v1671_v42  ;;  %429 = vst.msk [vmem:[%s2067_s17 + $0xc] sm:$0xf] %vm425_vm2, %v1666_v43  ;;  %v1672_v49 = vpack.c.bf16 %v333_v48, %v333_v48 }
  0xf2   : > { %437 = vst.msk [vmem:[%s2067_s17 + $0x2c] sm:$0xf] %vm425_vm2, %v1674_v46  ;;  %427 = vst.msk [vmem:[%s2067_s17 + $0x4] sm:$0xf] %vm425_vm2, %v1664_v47 }
  0xf3   : > { %435 = vst.msk [vmem:[%s2067_s17 + $0x24] sm:$0xf] %vm425_vm2, %v1672_v49 }
  0xf4   : > { %v1781_v50 = vpop.f32.mrb[4].mxu0 }
  0xf5   : > { %v1669_v51 = vpack.c.bf16 %v1781_v50, %v1781_v50  ;;  %v1789_v52 = vpop.f32.mrb[4].mxu1  ;;  %v314_v53 = vpop.f32.mrb[5].mxu0 }
  0xf6   : > { %v1677_v54 = vpack.c.bf16 %v1789_v52, %v1789_v52  ;;  %v1667_v55 = vpack.c.bf16 %v314_v53, %v314_v53  ;;  %v346_v56 = vpop.f32.mrb[5].mxu1  ;;  %v1782_v57 = vpop.f32.mrb[6].mxu0 }
  0xf7   : > { %432 = vst.msk [vmem:[%s2067_s17 + $0x18] sm:$0xf] %vm425_vm2, %v1669_v51  ;;  %v1675_v58 = vpack.c.bf16 %v346_v56, %v346_v56  ;;  %v1670_v59 = vpack.c.bf16 %v1782_v57, %v1782_v57  ;;  %v1790_v60 = vpop.f32.mrb[6].mxu1  ;;  %v317_v61 = vpop.f32.mrb[7].mxu0 }
  0xf8   : > { %440 = vst.msk [vmem:[%s2067_s17 + $0x38] sm:$0xf] %vm425_vm2, %v1677_v54  ;;  %430 = vst.msk [vmem:[%s2067_s17 + $0x10] sm:$0xf] %vm425_vm2, %v1667_v55  ;;  %v1678_v62 = vpack.c.bf16 %v1790_v60, %v1790_v60  ;;  %v1668_v63 = vpack.c.bf16 %v317_v61, %v317_v61  ;;  %v349_v0 = vpop.f32.mrb[7].mxu1 }
  0xf9   : > { %438 = vst.msk [vmem:[%s2067_s17 + $0x30] sm:$0xf] %vm425_vm2, %v1675_v58  ;;  %433 = vst.msk [vmem:[%s2067_s17 + $0x1c] sm:$0xf] %vm425_vm2, %v1670_v59  ;;  %v1676_v1 = vpack.c.bf16 %v349_v0, %v349_v0 }
  0xfa   : > { %441 = vst.msk [vmem:[%s2067_s17 + $0x3c] sm:$0xf] %vm425_vm2, %v1678_v62  ;;  %431 = vst.msk [vmem:[%s2067_s17 + $0x14] sm:$0xf] %vm425_vm2, %v1668_v63 }
  0xfb   : > { %439 = vst.msk [vmem:[%s2067_s17 + $0x34] sm:$0xf] %vm425_vm2, %v1676_v1 }
  0xfc   : > { %v1813_v2 = vpop.f32.mrb[8].mxu0 }
  0xfd   : > { %v1795_v3 = vpop.f32.mrb[8].mxu1  ;;  %v1697_v4 = vpack.c.bf16 %v1813_v2, %v1813_v2  ;;  %v664_v5 = vpop.f32.mrb[9].mxu0 }
  0xfe   : > { %v1681_v6 = vpack.c.bf16 %v1795_v3, %v1795_v3  ;;  %v481_v7 = vpop.f32.mrb[9].mxu1  ;;  %v1695_v8 = vpack.c.bf16 %v664_v5, %v664_v5  ;;  %v1814_v9 = vpop.f32.mrb[10].mxu0 }
  0xff   : > { %1595 = vst.msk [vmem:[%s2067_s17 + $0x88] sm:$0xf] %vm425_vm2, %v1697_v4  ;;  %v1679_v10 = vpack.c.bf16 %v481_v7, %v481_v7  ;;  %v1796_v11 = vpop.f32.mrb[10].mxu1  ;;  %v1698_v12 = vpack.c.bf16 %v1814_v9, %v1814_v9  ;;  %v667_v13 = vpop.f32.mrb[11].mxu0 }
 0x100   : > { %1554 = vst.msk [vmem:[%s2067_s17 + $0x48] sm:$0xf] %vm425_vm2, %v1681_v6  ;;  %1593 = vst.msk [vmem:[%s2067_s17 + $0x80] sm:$0xf] %vm425_vm2, %v1695_v8  ;;  %v1682_v14 = vpack.c.bf16 %v1796_v11, %v1796_v11  ;;  %v484_v15 = vpop.f32.mrb[11].mxu1  ;;  %v1696_v16 = vpack.c.bf16 %v667_v13, %v667_v13 }
 0x101   : > { %1552 = vst.msk [vmem:[%s2067_s17 + $0x40] sm:$0xf] %vm425_vm2, %v1679_v10  ;;  %1596 = vst.msk [vmem:[%s2067_s17 + $0x8c] sm:$0xf] %vm425_vm2, %v1698_v12  ;;  %v1680_v17 = vpack.c.bf16 %v484_v15, %v484_v15 }
 0x102   : > { %1555 = vst.msk [vmem:[%s2067_s17 + $0x4c] sm:$0xf] %vm425_vm2, %v1682_v14  ;;  %1594 = vst.msk [vmem:[%s2067_s17 + $0x84] sm:$0xf] %vm425_vm2, %v1696_v16 }
 0x103   : > { %1553 = vst.msk [vmem:[%s2067_s17 + $0x44] sm:$0xf] %vm425_vm2, %v1680_v17 }
 0x104   : > { %v1817_v18 = vpop.f32.mrb[12].mxu0 }
 0x105   : > { %v1799_v19 = vpop.f32.mrb[12].mxu1  ;;  %v1701_v20 = vpack.c.bf16 %v1817_v18, %v1817_v18  ;;  %v680_v21 = vpop.f32.mrb[13].mxu0 }
 0x106   : > { %v1685_v22 = vpack.c.bf16 %v1799_v19, %v1799_v19  ;;  %v497_v23 = vpop.f32.mrb[13].mxu1  ;;  %v1699_v24 = vpack.c.bf16 %v680_v21, %v680_v21  ;;  %v1818_v25 = vpop.f32.mrb[14].mxu0 }
 0x107   : > { %1599 = vst.msk [vmem:[%s2067_s17 + $0x98] sm:$0xf] %vm425_vm2, %v1701_v20  ;;  %v1683_v26 = vpack.c.bf16 %v497_v23, %v497_v23  ;;  %v1800_v27 = vpop.f32.mrb[14].mxu1  ;;  %v1702_v28 = vpack.c.bf16 %v1818_v25, %v1818_v25  ;;  %v683_v29 = vpop.f32.mrb[15].mxu0 }
 0x108   : > { %1558 = vst.msk [vmem:[%s2067_s17 + $0x58] sm:$0xf] %vm425_vm2, %v1685_v22  ;;  %1597 = vst.msk [vmem:[%s2067_s17 + $0x90] sm:$0xf] %vm425_vm2, %v1699_v24  ;;  %v1686_v30 = vpack.c.bf16 %v1800_v27, %v1800_v27  ;;  %v500_v31 = vpop.f32.mrb[15].mxu1  ;;  %v1700_v32 = vpack.c.bf16 %v683_v29, %v683_v29 }
 0x109   : > { %1556 = vst.msk [vmem:[%s2067_s17 + $0x50] sm:$0xf] %vm425_vm2, %v1683_v26  ;;  %1600 = vst.msk [vmem:[%s2067_s17 + $0x9c] sm:$0xf] %vm425_vm2, %v1702_v28  ;;  %v1684_v33 = vpack.c.bf16 %v500_v31, %v500_v31 }
 0x10a   : > { %1559 = vst.msk [vmem:[%s2067_s17 + $0x5c] sm:$0xf] %vm425_vm2, %v1686_v30  ;;  %1598 = vst.msk [vmem:[%s2067_s17 + $0x94] sm:$0xf] %vm425_vm2, %v1700_v32 }
 0x10b   : > { %1557 = vst.msk [vmem:[%s2067_s17 + $0x54] sm:$0xf] %vm425_vm2, %v1684_v33 }
 0x10c   : > { %v1821_v34 = vpop.f32.mrb[16].mxu0 }
 0x10d   : > { %v1803_v35 = vpop.f32.mrb[16].mxu1  ;;  %v1705_v36 = vpack.c.bf16 %v1821_v34, %v1821_v34  ;;  %v696_v37 = vpop.f32.mrb[17].mxu0 }
 0x10e   : > { %v1689_v38 = vpack.c.bf16 %v1803_v35, %v1803_v35  ;;  %v513_v39 = vpop.f32.mrb[17].mxu1  ;;  %v1703_v40 = vpack.c.bf16 %v696_v37, %v696_v37  ;;  %v1822_v41 = vpop.f32.mrb[18].mxu0 }
 0x10f   : > { %1603 = vst.msk [vmem:[%s2067_s17 + $0xa8] sm:$0xf] %vm425_vm2, %v1705_v36  ;;  %v1687_v42 = vpack.c.bf16 %v513_v39, %v513_v39  ;;  %v1804_v43 = vpop.f32.mrb[18].mxu1  ;;  %v1706_v44 = vpack.c.bf16 %v1822_v41, %v1822_v41  ;;  %v699_v45 = vpop.f32.mrb[19].mxu0 }
 0x110   : > { %1562 = vst.msk [vmem:[%s2067_s17 + $0x68] sm:$0xf] %vm425_vm2, %v1689_v38  ;;  %1601 = vst.msk [vmem:[%s2067_s17 + $0xa0] sm:$0xf] %vm425_vm2, %v1703_v40  ;;  %v1690_v46 = vpack.c.bf16 %v1804_v43, %v1804_v43  ;;  %v516_v47 = vpop.f32.mrb[19].mxu1  ;;  %v1704_v48 = vpack.c.bf16 %v699_v45, %v699_v45 }
 0x111   : > { %1560 = vst.msk [vmem:[%s2067_s17 + $0x60] sm:$0xf] %vm425_vm2, %v1687_v42  ;;  %1604 = vst.msk [vmem:[%s2067_s17 + $0xac] sm:$0xf] %vm425_vm2, %v1706_v44  ;;  %v1688_v49 = vpack.c.bf16 %v516_v47, %v516_v47 }
 0x112   : > { %1563 = vst.msk [vmem:[%s2067_s17 + $0x6c] sm:$0xf] %vm425_vm2, %v1690_v46  ;;  %1602 = vst.msk [vmem:[%s2067_s17 + $0xa4] sm:$0xf] %vm425_vm2, %v1704_v48 }
 0x113   : > { %1561 = vst.msk [vmem:[%s2067_s17 + $0x64] sm:$0xf] %vm425_vm2, %v1688_v49 }
 0x114   : > { %v1825_v50 = vpop.f32.mrb[20].mxu0 }
 0x115   : > { %v1807_v51 = vpop.f32.mrb[20].mxu1  ;;  %v1709_v52 = vpack.c.bf16 %v1825_v50, %v1825_v50  ;;  %v712_v53 = vpop.f32.mrb[21].mxu0  ;;  %v1138_v50 = vld [vmem:[%s2067_s17] sm:$0xff] (%p1969_p4)  }
 0x116   : > { %v1693_v54 = vpack.c.bf16 %v1807_v51, %v1807_v51  ;;  %v529_v55 = vpop.f32.mrb[21].mxu1  ;;  %v1707_v56 = vpack.c.bf16 %v712_v53, %v712_v53  ;;  %v1826_v57 = vpop.f32.mrb[22].mxu0  ;;  %v1142_v51 = vld [vmem:[%s2067_s17 + $0x8] sm:$0xff] (%p1969_p4)   ;;  %v1150_v53 = vld [vmem:[%s2067_s17 + $0x18] sm:$0xff] (%p1969_p4)   ;;  %1139 = vst [vmem:[%s2245_s27] sm:$0xff] (%p1969_p4), %v1138_v50  }
 0x117   : > { %1607 = vst.msk [vmem:[%s2067_s17 + $0xb8] sm:$0xf] %vm425_vm2, %v1709_v52  ;;  %v1691_v58 = vpack.c.bf16 %v529_v55, %v529_v55  ;;  %v1808_v59 = vpop.f32.mrb[22].mxu1  ;;  %v1710_v60 = vpack.c.bf16 %v1826_v57, %v1826_v57  ;;  %v715_v61 = vpop.f32.mrb[23].mxu0  ;;  %v1146_v52 = vld [vmem:[%s2067_s17 + $0x10] sm:$0xff] (%p1969_p4)   ;;  %v1158_v55 = vld [vmem:[%s2067_s17 + $0x28] sm:$0xff] (%p1969_p4)  }
 0x118   : > { %1566 = vst.msk [vmem:[%s2067_s17 + $0x78] sm:$0xf] %vm425_vm2, %v1693_v54  ;;  %1605 = vst.msk [vmem:[%s2067_s17 + $0xb0] sm:$0xf] %vm425_vm2, %v1707_v56  ;;  %v1694_v62 = vpack.c.bf16 %v1808_v59, %v1808_v59  ;;  %v532_v63 = vpop.f32.mrb[23].mxu1  ;;  %v1708_v0 = vpack.c.bf16 %v715_v61, %v715_v61  ;;  %v1154_v54 = vld [vmem:[%s2067_s17 + $0x20] sm:$0xff] (%p1969_p4)  }
 0x119   : > { %1564 = vst.msk [vmem:[%s2067_s17 + $0x70] sm:$0xf] %vm425_vm2, %v1691_v58  ;;  %1608 = vst.msk [vmem:[%s2067_s17 + $0xbc] sm:$0xf] %vm425_vm2, %v1710_v60  ;;  %v1692_v1 = vpack.c.bf16 %v532_v63, %v532_v63  ;;  %v1162_v56 = vld [vmem:[%s2067_s17 + $0x30] sm:$0xff] (%p1969_p4)   ;;  %v1166_v57 = vld [vmem:[%s2067_s17 + $0x38] sm:$0xff] (%p1969_p4)  }
 0x11a   : > { %1567 = vst.msk [vmem:[%s2067_s17 + $0x7c] sm:$0xf] %vm425_vm2, %v1694_v62  ;;  %1606 = vst.msk [vmem:[%s2067_s17 + $0xb4] sm:$0xf] %vm425_vm2, %v1708_v0  ;;  %v1170_v58 = vld [vmem:[%s2067_s17 + $0x40] sm:$0xff] (%p1969_p4)   ;;  %v1174_v59 = vld [vmem:[%s2067_s17 + $0x48] sm:$0xff] (%p1969_p4)  }
 0x11b   : > { %1565 = vst.msk [vmem:[%s2067_s17 + $0x74] sm:$0xf] %vm425_vm2, %v1692_v1  ;;  %1143 = vst [vmem:[%s2245_s27 + $0x8] sm:$0xff] (%p1969_p4), %v1142_v51   ;;  %v1178_v60 = vld [vmem:[%s2067_s17 + $0x50] sm:$0xff] (%p1969_p4)   ;;  %v1182_v61 = vld [vmem:[%s2067_s17 + $0x58] sm:$0xff] (%p1969_p4)  }
 0x11c   : > { %v1849_v2 = vpop.f32.mrb[24].mxu0  ;;  %1147 = vst [vmem:[%s2245_s27 + $0x10] sm:$0xff] (%p1969_p4), %v1146_v52   ;;  %1151 = vst [vmem:[%s2245_s27 + $0x18] sm:$0xff] (%p1969_p4), %v1150_v53   ;;  %v1186_v62 = vld [vmem:[%s2067_s17 + $0x60] sm:$0xff] (%p1969_p4)   ;;  %v1190_v63 = vld [vmem:[%s2067_s17 + $0x68] sm:$0xff] (%p1969_p4)  }
 0x11d   : > { %v1831_v3 = vpop.f32.mrb[24].mxu1  ;;  %1094 = vst.msk [vmem:[%s2168_s21 + $0x10] sm:$0xff] %vm235_vm1, %v1849_v2  ;;  %v1029_v4 = vpop.f32.mrb[25].mxu0  ;;  %1155 = vst [vmem:[%s2245_s27 + $0x20] sm:$0xff] (%p1969_p4), %v1154_v54   ;;  %v1202_v2 = vld [vmem:[%s2067_s17 + $0x80] sm:$0xff] (%p1969_p4)  }
 0x11e   : > { %v1713_v5 = vpack.c.bf16 %v1831_v3, %v1831_v3  ;;  %v847_v6 = vpop.f32.mrb[25].mxu1  ;;  %1092 = vst.msk [vmem:[%s2168_s21] sm:$0xff] %vm235_vm1, %v1029_v4  ;;  %v1850_v7 = vpop.f32.mrb[26].mxu0  ;;  %1159 = vst [vmem:[%s2245_s27 + $0x28] sm:$0xff] (%p1969_p4), %v1158_v55   ;;  %v1206_v3 = vld [vmem:[%s2067_s17 + $0x88] sm:$0xff] (%p1969_p4)   ;;  %v1210_v4 = vld [vmem:[%s2067_s17 + $0x90] sm:$0xff] (%p1969_p4)  }
 0x11f   : > { %v1711_v8 = vpack.c.bf16 %v847_v6, %v847_v6  ;;  %v1832_v9 = vpop.f32.mrb[26].mxu1  ;;  %1095 = vst.msk [vmem:[%s2168_s21 + $0x18] sm:$0xff] %vm235_vm1, %v1850_v7  ;;  %v1032_v10 = vpop.f32.mrb[27].mxu0  ;;  %1163 = vst [vmem:[%s2245_s27 + $0x30] sm:$0xff] (%p1969_p4), %v1162_v56   ;;  %v1218_v6 = vld [vmem:[%s2067_s17 + $0xa0] sm:$0xff] (%p1969_p4)   ;;  %v1222_v7 = vld [vmem:[%s2067_s17 + $0xa8] sm:$0xff] (%p1969_p4)  }
 0x120   : > { %1636 = vst.msk [vmem:[%s2067_s17 + $0xc8] sm:$0xf] %vm425_vm2, %v1713_v5  ;;  %v1714_v11 = vpack.c.bf16 %v1832_v9, %v1832_v9  ;;  %v850_v12 = vpop.f32.mrb[27].mxu1  ;;  %1167 = vst [vmem:[%s2245_s27 + $0x38] sm:$0xff] (%p1969_p4), %v1166_v57   ;;  %v1214_v5 = vld [vmem:[%s2067_s17 + $0x98] sm:$0xff] (%p1969_p4)  }
 0x121   : > { %1093 = vst.msk [vmem:[%s2168_s21 + $0x8] sm:$0xff] %vm235_vm1, %v1032_v10  ;;  %v1712_v13 = vpack.c.bf16 %v850_v12, %v850_v12  ;;  %1171 = vst [vmem:[%s2245_s27 + $0x80] sm:$0xff] (%p1969_p4), %v1170_v58   ;;  %v1198_v1 = vld [vmem:[%s2067_s17 + $0x78] sm:$0xff] (%p1969_p4)  }
 0x122   : > { %1634 = vst.msk [vmem:[%s2067_s17 + $0xc0] sm:$0xf] %vm425_vm2, %v1711_v8  ;;  %1637 = vst.msk [vmem:[%s2067_s17 + $0xcc] sm:$0xf] %vm425_vm2, %v1714_v11  ;;  %v1194_v0 = vld [vmem:[%s2067_s17 + $0x70] sm:$0xff] (%p1969_p4)   ;;  %v1230_v9 = vld [vmem:[%s2067_s17 + $0xb8] sm:$0xff] (%p1969_p4)  }
 0x123   : > { %1635 = vst.msk [vmem:[%s2067_s17 + $0xc4] sm:$0xf] %vm425_vm2, %v1712_v13  ;;  %1175 = vst [vmem:[%s2245_s27 + $0x88] sm:$0xff] (%p1969_p4), %v1174_v59   ;;  %v1226_v8 = vld [vmem:[%s2067_s17 + $0xb0] sm:$0xff] (%p1969_p4)  }
 0x124   : > { %v1853_v14 = vpop.f32.mrb[28].mxu0  ;;  %1179 = vst [vmem:[%s2245_s27 + $0x90] sm:$0xff] (%p1969_p4), %v1178_v60   ;;  %1183 = vst [vmem:[%s2245_s27 + $0x98] sm:$0xff] (%p1969_p4), %v1182_v61  }
 0x125   : > { %v1835_v15 = vpop.f32.mrb[28].mxu1  ;;  %1098 = vst.msk [vmem:[%s2168_s21 + $0x30] sm:$0xff] %vm235_vm1, %v1853_v14  ;;  %v1045_v16 = vpop.f32.mrb[29].mxu0  ;;  %1187 = vst [vmem:[%s2245_s27 + $0xa0] sm:$0xff] (%p1969_p4), %v1186_v62  }
 0x126   : > { %v1717_v17 = vpack.c.bf16 %v1835_v15, %v1835_v15  ;;  %v863_v18 = vpop.f32.mrb[29].mxu1  ;;  %1096 = vst.msk [vmem:[%s2168_s21 + $0x20] sm:$0xff] %vm235_vm1, %v1045_v16  ;;  %v1854_v19 = vpop.f32.mrb[30].mxu0  ;;  %1191 = vst [vmem:[%s2245_s27 + $0xa8] sm:$0xff] (%p1969_p4), %v1190_v63  }
 0x127   : > { %v1715_v20 = vpack.c.bf16 %v863_v18, %v863_v18  ;;  %v1836_v21 = vpop.f32.mrb[30].mxu1  ;;  %1099 = vst.msk [vmem:[%s2168_s21 + $0x38] sm:$0xff] %vm235_vm1, %v1854_v19  ;;  %v1048_v22 = vpop.f32.mrb[31].mxu0  ;;  %1195 = vst [vmem:[%s2245_s27 + $0xb0] sm:$0xff] (%p1969_p4), %v1194_v0  }
 0x128   : > { %1640 = vst.msk [vmem:[%s2067_s17 + $0xd8] sm:$0xf] %vm425_vm2, %v1717_v17  ;;  %v1718_v23 = vpack.c.bf16 %v1836_v21, %v1836_v21  ;;  %v866_v24 = vpop.f32.mrb[31].mxu1  ;;  %1199 = vst [vmem:[%s2245_s27 + $0xb8] sm:$0xff] (%p1969_p4), %v1198_v1  }
 0x129   : > { %1097 = vst.msk [vmem:[%s2168_s21 + $0x28] sm:$0xff] %vm235_vm1, %v1048_v22  ;;  %v1716_v25 = vpack.c.bf16 %v866_v24, %v866_v24  ;;  %1203 = vst [vmem:[%s2245_s27 + $0x100] sm:$0xff] (%p1969_p4), %v1202_v2   ;;  %v1238_v11 = vld [vmem:[%s2067_s17 + $0xc8] sm:$0xff] (%p1969_p4)  }
 0x12a   : > { %1638 = vst.msk [vmem:[%s2067_s17 + $0xd0] sm:$0xf] %vm425_vm2, %v1715_v20  ;;  %1641 = vst.msk [vmem:[%s2067_s17 + $0xdc] sm:$0xf] %vm425_vm2, %v1718_v23  ;;  %v1234_v10 = vld [vmem:[%s2067_s17 + $0xc0] sm:$0xff] (%p1969_p4)  }
 0x12b   : > { %1639 = vst.msk [vmem:[%s2067_s17 + $0xd4] sm:$0xf] %vm425_vm2, %v1716_v25  ;;  %1207 = vst [vmem:[%s2245_s27 + $0x108] sm:$0xff] (%p1969_p4), %v1206_v3  }
 0x12c   : > { %v1857_v26 = vpop.f32.mrb[32].mxu0  ;;  %1211 = vst [vmem:[%s2245_s27 + $0x110] sm:$0xff] (%p1969_p4), %v1210_v4   ;;  %1215 = vst [vmem:[%s2245_s27 + $0x118] sm:$0xff] (%p1969_p4), %v1214_v5  }
 0x12d   : > { %v1839_v27 = vpop.f32.mrb[32].mxu1  ;;  %1102 = vst.msk [vmem:[%s2168_s21 + $0x50] sm:$0xff] %vm235_vm1, %v1857_v26  ;;  %v1061_v28 = vpop.f32.mrb[33].mxu0  ;;  %1219 = vst [vmem:[%s2245_s27 + $0x120] sm:$0xff] (%p1969_p4), %v1218_v6  }
 0x12e   : > { %v1721_v29 = vpack.c.bf16 %v1839_v27, %v1839_v27  ;;  %v879_v30 = vpop.f32.mrb[33].mxu1  ;;  %1100 = vst.msk [vmem:[%s2168_s21 + $0x40] sm:$0xff] %vm235_vm1, %v1061_v28  ;;  %v1858_v31 = vpop.f32.mrb[34].mxu0  ;;  %1223 = vst [vmem:[%s2245_s27 + $0x128] sm:$0xff] (%p1969_p4), %v1222_v7  }
 0x12f   : > { %v1719_v32 = vpack.c.bf16 %v879_v30, %v879_v30  ;;  %v1840_v33 = vpop.f32.mrb[34].mxu1  ;;  %1103 = vst.msk [vmem:[%s2168_s21 + $0x58] sm:$0xff] %vm235_vm1, %v1858_v31  ;;  %v1064_v34 = vpop.f32.mrb[35].mxu0  ;;  %1227 = vst [vmem:[%s2245_s27 + $0x130] sm:$0xff] (%p1969_p4), %v1226_v8  }
 0x130   : > { %1644 = vst.msk [vmem:[%s2067_s17 + $0xe8] sm:$0xf] %vm425_vm2, %v1721_v29  ;;  %v1722_v35 = vpack.c.bf16 %v1840_v33, %v1840_v33  ;;  %v882_v36 = vpop.f32.mrb[35].mxu1  ;;  %1231 = vst [vmem:[%s2245_s27 + $0x138] sm:$0xff] (%p1969_p4), %v1230_v9  }
 0x131   : > { %1101 = vst.msk [vmem:[%s2168_s21 + $0x48] sm:$0xff] %vm235_vm1, %v1064_v34  ;;  %v1720_v37 = vpack.c.bf16 %v882_v36, %v882_v36  ;;  %1235 = vst [vmem:[%s2245_s27 + $0x180] sm:$0xff] (%p1969_p4), %v1234_v10   ;;  %v1246_v13 = vld [vmem:[%s2067_s17 + $0xd8] sm:$0xff] (%p1969_p4)  }
 0x132   : > { %1642 = vst.msk [vmem:[%s2067_s17 + $0xe0] sm:$0xf] %vm425_vm2, %v1719_v32  ;;  %1645 = vst.msk [vmem:[%s2067_s17 + $0xec] sm:$0xf] %vm425_vm2, %v1722_v35  ;;  %v1242_v12 = vld [vmem:[%s2067_s17 + $0xd0] sm:$0xff] (%p1969_p4)  }
 0x133   : > { %1643 = vst.msk [vmem:[%s2067_s17 + $0xe4] sm:$0xf] %vm425_vm2, %v1720_v37  ;;  %1239 = vst [vmem:[%s2245_s27 + $0x188] sm:$0xff] (%p1969_p4), %v1238_v11  }
 0x134   : > { %v1861_v38 = vpop.f32.mrb[36].mxu0  ;;  %1243 = vst [vmem:[%s2245_s27 + $0x190] sm:$0xff] (%p1969_p4), %v1242_v12   ;;  %1247 = vst [vmem:[%s2245_s27 + $0x198] sm:$0xff] (%p1969_p4), %v1246_v13  }
 0x135   : > { %v1843_v39 = vpop.f32.mrb[36].mxu1  ;;  %1106 = vst.msk [vmem:[%s2168_s21 + $0x70] sm:$0xff] %vm235_vm1, %v1861_v38  ;;  %v1077_v40 = vpop.f32.mrb[37].mxu0  ;;  %1119 = sbr.rel (!%p1969_p4) target bundleno = 324 (0x144), region = 36 }
 0x136   : > { %v1725_v41 = vpack.c.bf16 %v1843_v39, %v1843_v39  ;;  %v895_v42 = vpop.f32.mrb[37].mxu1  ;;  %1104 = vst.msk [vmem:[%s2168_s21 + $0x60] sm:$0xff] %vm235_vm1, %v1077_v40  ;;  %v1862_v43 = vpop.f32.mrb[38].mxu0 }
 0x137   : > { %v1723_v44 = vpack.c.bf16 %v895_v42, %v895_v42  ;;  %v1844_v45 = vpop.f32.mrb[38].mxu1  ;;  %1107 = vst.msk [vmem:[%s2168_s21 + $0x78] sm:$0xff] %vm235_vm1, %v1862_v43  ;;  %v1080_v46 = vpop.f32.mrb[39].mxu0 }
 0x138   : > { %1648 = vst.msk [vmem:[%s2067_s17 + $0xf8] sm:$0xf] %vm425_vm2, %v1725_v41  ;;  %v1726_v47 = vpack.c.bf16 %v1844_v45, %v1844_v45  ;;  %v898_v48 = vpop.f32.mrb[39].mxu1 }
 0x139   : > { %1105 = vst.msk [vmem:[%s2168_s21 + $0x68] sm:$0xff] %vm235_vm1, %v1080_v46  ;;  %v1724_v49 = vpack.c.bf16 %v898_v48, %v898_v48  ;;  %v1254_v15 = vld [vmem:[%s2067_s17 + $0xe8] sm:$0xff] (%p1969_p4)  }
 0x13a   : > { %1646 = vst.msk [vmem:[%s2067_s17 + $0xf0] sm:$0xf] %vm425_vm2, %v1723_v44  ;;  %1649 = vst.msk [vmem:[%s2067_s17 + $0xfc] sm:$0xf] %vm425_vm2, %v1726_v47  ;;  %v1250_v14 = vld [vmem:[%s2067_s17 + $0xe0] sm:$0xff] (%p1969_p4)  }
 0x13b   : > { %1647 = vst.msk [vmem:[%s2067_s17 + $0xf4] sm:$0xf] %vm425_vm2, %v1724_v49  ;;  %1251 = vst [vmem:[%s2245_s27 + $0x1a0] sm:$0xff] (%p1969_p4), %v1250_v14  }
 0x13c   : > { %1255 = vst [vmem:[%s2245_s27 + $0x1a8] sm:$0xff] %v1254_v15  }
 0x141   : > { %v1262_v17 = vld [vmem:[%s2067_s17 + $0xf8] sm:$0xff]  }
 0x142   : > { %v1258_v16 = vld [vmem:[%s2067_s17 + $0xf0] sm:$0xff]   ;;  %1263 = vst [vmem:[%s2245_s27 + $0x1b8] sm:$0xff] %v1262_v17  }
 0x143   : > { %1259 = vst [vmem:[%s2245_s27 + $0x1b0] sm:$0xff] %v1258_v16  }
 0x144 PF: > { %p12_p8 = scmp.ge.s32.totalorder %s1959_s19, 4   ;;  %s2324_s15 = smov %s1913_s16 }
 0x145   : > { %s2325_s16 = smov %s1967_s22  ;;  %s2326_s17 = smov %s1959_s19 }
 0x146   :  { %14 = sbr.rel (!%p12_p8) target bundleno = 2 (0x2), region = 121 }

</bundles_post_ra>
